<compile_context>
chip_gen: v6e
topology: v6e:2x2x1
jax: 0.10.0
libtpu: 0.0.40
codegen_flags: <defaults>
</compile_context>

<pallas_src>
import numpy as np
import jax
import jax.numpy as jnp
from jax.experimental import pallas as pl
from jax.experimental.pallas import tpu as pltpu


# ----------------------------------------------------------------------------
# Glue: multi-resolution hash-grid encoding (tcnn 'Grid'/'Hash', linear interp)
# TODO(synk): the data-dependent gather over the multi-MiB hash table stays in
#             XLA; the long-term fix is a Pallas gather kernel that keeps coarse
#             levels VMEM-resident and does a manual-DMA 8-corner gather for
#             fine levels, fused with the trilinear weights, feeding the MLP
#             kernel directly in bf16.  Tables are bf16 to halve gather bytes;
#             the L levels x 8 corners are batched into 8 gathers on a
#             flattened (L*T, F) table.
# ----------------------------------------------------------------------------
_PRIMES = jnp.array([1, 2654435761, 805459861], dtype=jnp.uint32)


def hash_grid_encode(x01, tables, scales):
    """x01: (N,3) in [0,1]. tables: (L, T, F). Returns (N, L*F) float32."""
    N = x01.shape[0]
    L, T, F = tables.shape
    x01 = jnp.clip(x01, 0.0, 1.0)                       # clamp out-of-box points
    sc = jnp.asarray(np.asarray(scales, np.float32))    # (L,)
    pos = x01[:, None, :] * sc[None, :, None] + 0.5     # (N, L, 3)
    pos_floor = jnp.floor(pos)
    frac = pos - pos_floor
    base = pos_floor.astype(jnp.uint32)                 # (N, L, 3)
    flat_tables = tables.reshape(L * T, F)
    level_off = jnp.arange(L, dtype=jnp.uint32) * jnp.uint32(T)
    acc = jnp.zeros((N, L, F), jnp.float32)
    for c in range(8):                                   # 8 batched gathers total
        off = np.array([(c >> 0) & 1, (c >> 1) & 1, (c >> 2) & 1],
                       dtype=np.uint32)
        corner = base + jnp.asarray(off, dtype=jnp.uint32)
        w = jnp.prod(jnp.where(off[None, None, :] == 1, frac, 1.0 - frac),
                     axis=-1, keepdims=True)             # (N, L, 1)
        hp = corner * _PRIMES[None, None, :]
        idx = (hp[..., 0] ^ hp[..., 1] ^ hp[..., 2]) % jnp.uint32(T)
        flat_idx = (idx + level_off[None, :]).astype(jnp.int32)
        acc = acc + w * flat_tables[flat_idx].astype(jnp.float32)
    return acc.reshape(N, L * F)


# ----------------------------------------------------------------------------
# Spherical harmonics degree-4 (tcnn formulas). Precomputed in the wrapper so
# the kernel never lane-concatenates 16 width-1 columns.
# ----------------------------------------------------------------------------
def _sh_deg4_cols(x, y, z):
    xy, xz, yz = x * y, x * z, y * z
    x2, y2, z2 = x * x, y * y, z * z
    return [
        jnp.full_like(x, 0.28209479177387814),
        -0.48860251190291987 * y,
        0.48860251190291987 * z,
        -0.48860251190291987 * x,
        1.0925484305920792 * xy,
        -1.0925484305920792 * yz,
        0.94617469575755997 * z2 - 0.31539156525251999,
        -1.0925484305920792 * xz,
        0.54627421529603959 * (x2 - y2),
        0.59004358992664352 * y * (-3.0 * x2 + y2),
        2.8906114426405538 * xy * z,
        0.45704579946446572 * y * (1.0 - 5.0 * z2),
        0.3731763325901154 * z * (5.0 * z2 - 3.0),
        0.45704579946446572 * x * (1.0 - 5.0 * z2),
        1.4453057213202769 * z * (x2 - y2),
        0.59004358992664352 * x * (-x2 + 3.0 * y2),
    ]


def sh_encode_deg4(d):
    x, y, z = d[:, 0:1], d[:, 1:2], d[:, 2:3]
    return jnp.concatenate(_sh_deg4_cols(x, y, z), axis=-1)


# ----------------------------------------------------------------------------
# Pallas kernel: fused  xyz-MLP -> (sigma, h)  and  rgb-MLP -> rgb  (transposed)
# ----------------------------------------------------------------------------
def _stable_sigmoid(v):
    # No exp() overflow for v = -1000*h; approx reciprocal rides the EUP slot
    # (note: ~1e-3-level relative error vs an exact sigmoid).
    e = jnp.exp(-jnp.abs(v))
    s = pl.reciprocal(1.0 + e, approx=True)
    return jnp.where(v >= 0.0, s, e * s)


def ngp_mlp_pallas(enc, ray_d, xyz_ws, rgb_ws, *, tile_n=4096):
    """enc: (N, 32) hash features. ray_d: (N, 3) UNnormalized directions.
    xyz_ws: bf16 weights (in,out) for the xyz MLP (ReLU hidden, linear out).
    rgb_ws: [r0 (32,H), r1 (H,H), r2 (H,3)] bf16 weights for rgb_net.
    Returns rgbs (N,3) f32 sigmoid-activated and sigmas (N,1) f32."""
    N, enc_dim = enc.shape
    n_xyz = len(xyz_ws)

    # Big tile amortizes the ~0.35us per-step overhead and MXU fill/drain on
    # these tiny-K matmuls; keep >=2 grid steps when N allows so v7x's two
    # TensorCores both get work; multiple of 128 -> lane-dense unmasked stores.
    tile_n = int(tile_n)
    tile_n = max(128, min(tile_n, max(128, (N + 1) // 2)))
    tile_n = ((tile_n + 127) // 128) * 128
    n_pad = pl.cdiv(N, tile_n) * tile_n

    # ---- wrapper-side layout plumbing: point axis on LANES everywhere -------
    dn = ray_d.astype(jnp.float32)
    dn = dn / jnp.linalg.norm(dn, axis=1, keepdims=True)
    sh = sh_encode_deg4(dn)                                   # (N, 16) f32

    enc_t = enc.astype(jnp.bfloat16).T                        # (32, N) bf16
    sh_t = sh.astype(jnp.bfloat16).T                          # (16, N) bf16
    if n_pad != N:                                            # pad point columns
        enc_t = jnp.pad(enc_t, ((0, 0), (0, n_pad - N)))
        sh_t = jnp.pad(sh_t, ((0, 0), (0, n_pad - N)))

    # Weights transposed to (out, in): kernel computes y^T = W^T @ x^T.
    xyz_wts = [w.T for w in xyz_ws]                           # (out, in) bf16
    r0, r1, r2 = rgb_ws
    r0_sh_t = r0[:16, :].T                                    # (H, 16) SH half
    r0_h_t = r0[16:, :].T                                     # (H, 16) xyz-feat half
    r1_t = r1.T                                               # (H, H)
    r2_t = jnp.pad(r2.T, ((0, 8 - r2.T.shape[0]), (0, 0)))    # (8, H), rows 3..7 zero

    def kernel(*refs):
        enc_ref, sh_ref = refs[0], refs[1]
        xyz_refs = refs[2:2 + n_xyz]
        r0s_ref, r0h_ref, r1_ref, r2_ref = refs[2 + n_xyz:2 + n_xyz + 4]
        out_ref = refs[-1]

        # ---- xyz_encoder MLP (transposed): bf16 MXU operands, f32 acc ----
        h = enc_ref[...]                                       # (32, tn) bf16
        for w in xyz_refs[:-1]:
            h = jnp.maximum(
                jnp.dot(w[...], h, preferred_element_type=jnp.float32),
                0.0).astype(jnp.bfloat16)
        h = jnp.dot(xyz_refs[-1][...], h,
                    preferred_element_type=jnp.float32)        # (16, tn) f32

        # ---- density head: sigma = sigmoid(-1000 * h[0]) ----
        sigma_t = _stable_sigmoid(h[0:1, :] * (-1000.0))       # (1, tn) f32

        # ---- rgb_net: fused 32-wide first layer split SH/h (no lane concat) --
        hb = h.astype(jnp.bfloat16)                            # (16, tn) bf16
        zz = jnp.maximum(
            jnp.dot(r0s_ref[...], sh_ref[...],
                    preferred_element_type=jnp.float32)
            + jnp.dot(r0h_ref[...], hb,
                      preferred_element_type=jnp.float32),
            0.0).astype(jnp.bfloat16)                          # (H, tn)
        zz = jnp.maximum(
            jnp.dot(r1_ref[...], zz, preferred_element_type=jnp.float32),
            0.0).astype(jnp.bfloat16)                          # (H, tn)
        rgb8 = jnp.dot(r2_ref[...], zz,
                       preferred_element_type=jnp.float32)     # (8, tn) f32
        rgb_t = _stable_sigmoid(rgb8[0:3, :])                  # (3, tn)

        # lane-dense output slab [r, g, b, sigma]: two sublane slice stores,
        # no width-4 lane concat, unmasked vst along lanes.
        out_ref[0:3, :] = rgb_t
        out_ref[3:4, :] = sigma_t

    grid = (n_pad // tile_n,)

    def col_spec(rows):
        return pl.BlockSpec((rows, tile_n), lambda i: (0, i))

    def full_spec(shape):
        # constant index map -> Pallas fetches the weight once and keeps it
        # resident (no per-step re-DMA).
        return pl.BlockSpec(shape, lambda i: (0, 0))

    in_specs = ([col_spec(enc_dim), col_spec(16)]
                + [full_spec(w.shape) for w in xyz_wts]
                + [full_spec(w.shape) for w in (r0_sh_t, r0_h_t, r1_t, r2_t)])
    out_specs = [col_spec(4)]
    out_shape = [jax.ShapeDtypeStruct((4, n_pad), jnp.float32)]

    (packed,) = pl.pallas_call(
        kernel,
        out_shape=out_shape,
        grid_spec=pltpu.PrefetchScalarGridSpec(
            num_scalar_prefetch=0,
            grid=grid,
            in_specs=in_specs,
            out_specs=out_specs),
        compiler_params=pltpu.CompilerParams(
            dimension_semantics=("parallel",),
            # explicit limit: above v5e's 16 MiB scoped default, well below
            # every generation's physical VMEM; our per-tile usage is ~1 MiB
            # at tile_n=4096 thanks to the lane-major layout.
            vmem_limit_bytes=32 * 1024 * 1024),
    )(enc_t, sh_t, *xyz_wts, r0_sh_t, r0_h_t, r1_t, r2_t)

    rgbs = packed[0:3, :N].T                                   # (N, 3) f32
    sigmas = packed[3:4, :N].T                                 # (N, 1) f32
    return rgbs, sigmas


# ----------------------------------------------------------------------------
# NGP parameters (deterministic synthetic init) and forward wrapper
# ----------------------------------------------------------------------------
def init_ngp_params(key, model_config, L=16, F=2, log2_T=22, N_min=16,
                    table_dtype=jnp.bfloat16, weight_dtype=jnp.bfloat16):
    rescale = model_config['rescale'] * 2          # == self.scale
    hidden = min(128, model_config['hidden_dim'])
    num_layers = model_config['num_layers']
    b = np.exp(np.log(2048 * rescale / N_min) / (L - 1))
    scales = [N_min * (b ** l) - 1.0 for l in range(L)]   # tcnn level scales
    T = 2 ** log2_T

    keys = jax.random.split(key, 5 + num_layers)
    hash_tables = jax.random.uniform(
        keys[0], (L, T, F), minval=-1e-4, maxval=1e-4,
        dtype=jnp.float32).astype(table_dtype)

    # xyz_encoder MLP: L*F -> hidden (ReLU) x num_layers -> 16 (linear)
    dims = [L * F] + [hidden] * num_layers + [16]
    xyz_ws = []
    for i in range(len(dims) - 1):
        w = jax.random.normal(keys[1 + i], (dims[i], dims[i + 1]),
                              jnp.float32) / np.sqrt(dims[i])
        xyz_ws.append(w.astype(weight_dtype))

    # rgb_net: 32 -> hidden -> hidden -> 3 ; first layer fused (32, H)
    r0 = (jax.random.normal(keys[-3], (32, hidden), jnp.float32)
          / np.sqrt(32)).astype(weight_dtype)
    r1 = (jax.random.normal(keys[-2], (hidden, hidden), jnp.float32)
          / np.sqrt(hidden)).astype(weight_dtype)
    r2 = (jax.random.normal(keys[-1], (hidden, 3), jnp.float32)
          / np.sqrt(hidden)).astype(weight_dtype)

    return {
        'xyz_min': jnp.full((1, 3), -rescale, jnp.float32),
        'xyz_max': jnp.full((1, 3), rescale, jnp.float32),
        'hash_tables': hash_tables,
        'scales': scales,
        'xyz_ws': xyz_ws,
        'rgb_ws': [r0, r1, r2],
    }


def ngp_forward(params, x, ray_d, return_addocc=False, tile_n=4096):
    """Mirrors NGP.forward(x, ray_d, return_addocc=...).
    x: (N,3) in [-scale, scale], ray_d: (N,3)."""
    if x.ndim > 2:
        x = jnp.squeeze(x, axis=0)
    x01 = (x - params['xyz_min']) / (params['xyz_max'] - params['xyz_min'])
    enc = hash_grid_encode(x01, params['hash_tables'], params['scales'])
    rgbs, sigmas = ngp_mlp_pallas(enc, ray_d, params['xyz_ws'],
                                  params['rgb_ws'], tile_n=tile_n)
    if return_addocc:
        # torch: sigmas (N,1) -> unsqueeze(0) -> unsqueeze(-1) -> squeeze(0) = (N,1,1)
        return rgbs, sigmas[:, :, None]
    return rgbs[None]                                   # (1, N, 3)


# ----------------------------------------------------------------------------
# Pure-JAX reference (same bf16 casts as the kernel) for a correctness check
# ----------------------------------------------------------------------------
def _ref_mlp(enc, ray_d, xyz_ws, rgb_ws):
    h = enc.astype(jnp.bfloat16)
    for w in xyz_ws[:-1]:
        h = jnp.maximum(jnp.dot(h, w, preferred_element_type=jnp.float32),
                        0.0).astype(jnp.bfloat16)
    h = jnp.dot(h, xyz_ws[-1], preferred_element_type=jnp.float32)
    sigma = jax.nn.sigmoid(h[:, 0:1] * -1000.0)
    dn = ray_d / jnp.linalg.norm(ray_d, axis=1, keepdims=True)
    z = jnp.concatenate([sh_encode_deg4(dn), h], axis=-1).astype(jnp.bfloat16)
    r0, r1, r2 = rgb_ws
    z = jnp.maximum(jnp.dot(z, r0, preferred_element_type=jnp.float32),
                    0.0).astype(jnp.bfloat16)
    z = jnp.maximum(jnp.dot(z, r1, preferred_element_type=jnp.float32),
                    0.0).astype(jnp.bfloat16)
    rgb = jax.nn.sigmoid(jnp.dot(z, r2, preferred_element_type=jnp.float32))
    return rgb, sigma


if __name__ == "__main__":
    key = jax.random.PRNGKey(0)
    kp, kx, kd = jax.random.split(key, 3)

    model_config = {'rescale': 0.5, 'hidden_dim': 64, 'num_layers': 1}
    scale = model_config['rescale'] * 2
    # smaller hash table than the real 2^22 to keep the demo light; the Pallas
    # kernel path is identical.
    params = init_ngp_params(kp, model_config, log2_T=16)

    N = 200                                 # deliberately not a tile multiple
    x = jax.random.uniform(kx, (N, 3), minval=-scale, maxval=scale,
                           dtype=jnp.float32)
    ray_d = jax.random.normal(kd, (N, 3), dtype=jnp.float32)

    # exercise padding + a multi-step grid with a small tile
    rgbs, sigmas = ngp_forward(params, x, ray_d, return_addocc=True, tile_n=128)
    jax.block_until_ready((rgbs, sigmas))
    assert rgbs.shape == (N, 3) and sigmas.shape == (N, 1, 1)
    assert bool(jnp.all(jnp.isfinite(rgbs))) and bool(jnp.all(jnp.isfinite(sigmas)))
    assert bool(jnp.all((rgbs >= -1e-3) & (rgbs <= 1.0 + 1e-3)))
    assert bool(jnp.all((sigmas >= -1e-3) & (sigmas <= 1.0 + 1e-3)))

    # numeric check against a pure-JAX reference using the same bf16 weights
    x01 = (x - params['xyz_min']) / (params['xyz_max'] - params['xyz_min'])
    enc = hash_grid_encode(x01, params['hash_tables'], params['scales'])
    rgb_ref, _ = _ref_mlp(enc, ray_d, params['xyz_ws'], params['rgb_ws'])
    assert bool(jnp.max(jnp.abs(rgbs - rgb_ref)) < 5e-2)

    out_default = ngp_forward(params, x, ray_d)          # default forward path
    jax.block_until_ready(out_default)
    assert out_default.shape == (1, N, 3)

    print("KERNEL_OK")
</pallas_src>

<mosaic_0001>
module attributes {stable_mosaic.version = 11 : i64} {
  func.func @kernel(%arg0: i32, %arg1: memref<32x128xbf16, #tpu.memory_space<vmem>>, %arg2: memref<16x128xbf16, #tpu.memory_space<vmem>>, %arg3: memref<64x32xbf16, #tpu.memory_space<vmem>>, %arg4: memref<16x64xbf16, #tpu.memory_space<vmem>>, %arg5: memref<64x16xbf16, #tpu.memory_space<vmem>>, %arg6: memref<64x16xbf16, #tpu.memory_space<vmem>>, %arg7: memref<64x64xbf16, #tpu.memory_space<vmem>>, %arg8: memref<8x64xbf16, #tpu.memory_space<vmem>>, %arg9: memref<4x128xf32, #tpu.memory_space<vmem>>) attributes {dimension_semantics = [#tpu.dimension_semantics<parallel>], iteration_bounds = array<i64: 2>, scalar_prefetch = 0 : i64, scratch_operands = 0 : i64, tpu.core_type = #tpu.core_type<tc>, window_params = [{transform_indices = @transform_0, window_bounds = array<i64: 32, 128>}, {transform_indices = @transform_1, window_bounds = array<i64: 16, 128>}, {pipeline_mode = #tpu.pipeline_mode<synchronous>, transform_indices = @transform_2, window_bounds = array<i64: 64, 32>}, {pipeline_mode = #tpu.pipeline_mode<synchronous>, transform_indices = @transform_3, window_bounds = array<i64: 16, 64>}, {pipeline_mode = #tpu.pipeline_mode<synchronous>, transform_indices = @transform_4, window_bounds = array<i64: 64, 16>}, {pipeline_mode = #tpu.pipeline_mode<synchronous>, transform_indices = @transform_5, window_bounds = array<i64: 64, 16>}, {pipeline_mode = #tpu.pipeline_mode<synchronous>, transform_indices = @transform_6, window_bounds = array<i64: 64, 64>}, {pipeline_mode = #tpu.pipeline_mode<synchronous>, transform_indices = @transform_7, window_bounds = array<i64: 8, 64>}, {transform_indices = @transform_8, window_bounds = array<i64: 4, 128>}]} {
    %c0 = arith.constant 0 : index
    %c0_0 = arith.constant 0 : index
    %0 = vector.load %arg1[%c0, %c0_0] : memref<32x128xbf16, #tpu.memory_space<vmem>>, vector<32x128xbf16>
    %c0_1 = arith.constant 0 : index
    %c0_2 = arith.constant 0 : index
    %1 = vector.load %arg3[%c0_1, %c0_2] : memref<64x32xbf16, #tpu.memory_space<vmem>>, vector<64x32xbf16>
    %cst = arith.constant dense<0.000000e+00> : vector<64x128xf32>
    %2 = tpu.matmul %1, %0, %cst {dimension_numbers = #tpu.dot_dimension_numbers<[1], [0], [0], [1], [0, 0, 1, 1], [], []>} : vector<64x32xbf16>, vector<32x128xbf16>, vector<64x128xf32> -> vector<64x128xf32>
    %cst_3 = arith.constant 0.000000e+00 : f32
    %3 = vector.broadcast %cst_3 : f32 to vector<64x128xf32>
    %4 = arith.maximumf %2, %3 : vector<64x128xf32>
    %5 = arith.truncf %4 : vector<64x128xf32> to vector<64x128xbf16>
    %c0_4 = arith.constant 0 : index
    %c0_5 = arith.constant 0 : index
    %6 = vector.load %arg4[%c0_4, %c0_5] : memref<16x64xbf16, #tpu.memory_space<vmem>>, vector<16x64xbf16>
    %cst_6 = arith.constant dense<0.000000e+00> : vector<16x128xf32>
    %7 = tpu.matmul %6, %5, %cst_6 {dimension_numbers = #tpu.dot_dimension_numbers<[1], [0], [0], [1], [0, 0, 1, 1], [], []>} : vector<16x64xbf16>, vector<64x128xbf16>, vector<16x128xf32> -> vector<16x128xf32>
    %8 = vector.extract_strided_slice %7 {offsets = [0, 0], sizes = [1, 128], strides = [1, 1]} : vector<16x128xf32> to vector<1x128xf32>
    %cst_7 = arith.constant -1.000000e+03 : f32
    %9 = vector.broadcast %cst_7 : f32 to vector<1x128xf32>
    %10 = arith.mulf %8, %9 : vector<1x128xf32>
    %11 = math.absf %10 : vector<1x128xf32>
    %cst_8 = arith.constant 0.000000e+00 : f32
    %12 = vector.broadcast %cst_8 : f32 to vector<1x128xf32>
    %13 = arith.subf %12, %11 : vector<1x128xf32>
    %14 = math.exp %13 : vector<1x128xf32>
    %cst_9 = arith.constant 1.000000e+00 : f32
    %15 = vector.broadcast %cst_9 : f32 to vector<1x128xf32>
    %16 = arith.addf %15, %14 : vector<1x128xf32>
    %17 = tpu.reciprocal %16 {approx = true} : vector<1x128xf32> -> vector<1x128xf32>
    %cst_10 = arith.constant 0.000000e+00 : f32
    %18 = vector.broadcast %cst_10 : f32 to vector<1x128xf32>
    %19 = arith.cmpf oge, %10, %18 : vector<1x128xf32>
    %20 = arith.mulf %14, %17 : vector<1x128xf32>
    %21 = arith.select %19, %17, %20 : vector<1x128xi1>, vector<1x128xf32>
    %22 = arith.truncf %7 : vector<16x128xf32> to vector<16x128xbf16>
    %c0_11 = arith.constant 0 : index
    %c0_12 = arith.constant 0 : index
    %23 = vector.load %arg5[%c0_11, %c0_12] : memref<64x16xbf16, #tpu.memory_space<vmem>>, vector<64x16xbf16>
    %c0_13 = arith.constant 0 : index
    %c0_14 = arith.constant 0 : index
    %24 = vector.load %arg2[%c0_13, %c0_14] : memref<16x128xbf16, #tpu.memory_space<vmem>>, vector<16x128xbf16>
    %cst_15 = arith.constant dense<0.000000e+00> : vector<64x128xf32>
    %25 = tpu.matmul %23, %24, %cst_15 {dimension_numbers = #tpu.dot_dimension_numbers<[1], [0], [0], [1], [0, 0, 1, 1], [], []>} : vector<64x16xbf16>, vector<16x128xbf16>, vector<64x128xf32> -> vector<64x128xf32>
    %c0_16 = arith.constant 0 : index
    %c0_17 = arith.constant 0 : index
    %26 = vector.load %arg6[%c0_16, %c0_17] : memref<64x16xbf16, #tpu.memory_space<vmem>>, vector<64x16xbf16>
    %cst_18 = arith.constant dense<0.000000e+00> : vector<64x128xf32>
    %27 = tpu.matmul %26, %22, %cst_18 {dimension_numbers = #tpu.dot_dimension_numbers<[1], [0], [0], [1], [0, 0, 1, 1], [], []>} : vector<64x16xbf16>, vector<16x128xbf16>, vector<64x128xf32> -> vector<64x128xf32>
    %28 = arith.addf %25, %27 : vector<64x128xf32>
    %cst_19 = arith.constant 0.000000e+00 : f32
    %29 = vector.broadcast %cst_19 : f32 to vector<64x128xf32>
    %30 = arith.maximumf %28, %29 : vector<64x128xf32>
    %31 = arith.truncf %30 : vector<64x128xf32> to vector<64x128xbf16>
    %c0_20 = arith.constant 0 : index
    %c0_21 = arith.constant 0 : index
    %32 = vector.load %arg7[%c0_20, %c0_21] : memref<64x64xbf16, #tpu.memory_space<vmem>>, vector<64x64xbf16>
    %cst_22 = arith.constant dense<0.000000e+00> : vector<64x128xf32>
    %33 = tpu.matmul %32, %31, %cst_22 {dimension_numbers = #tpu.dot_dimension_numbers<[1], [0], [0], [1], [0, 0, 1, 1], [], []>} : vector<64x64xbf16>, vector<64x128xbf16>, vector<64x128xf32> -> vector<64x128xf32>
    %cst_23 = arith.constant 0.000000e+00 : f32
    %34 = vector.broadcast %cst_23 : f32 to vector<64x128xf32>
    %35 = arith.maximumf %33, %34 : vector<64x128xf32>
    %36 = arith.truncf %35 : vector<64x128xf32> to vector<64x128xbf16>
    %c0_24 = arith.constant 0 : index
    %c0_25 = arith.constant 0 : index
    %37 = vector.load %arg8[%c0_24, %c0_25] : memref<8x64xbf16, #tpu.memory_space<vmem>>, vector<8x64xbf16>
    %cst_26 = arith.constant dense<0.000000e+00> : vector<8x128xf32>
    %38 = tpu.matmul %37, %36, %cst_26 {dimension_numbers = #tpu.dot_dimension_numbers<[1], [0], [0], [1], [0, 0, 1, 1], [], []>} : vector<8x64xbf16>, vector<64x128xbf16>, vector<8x128xf32> -> vector<8x128xf32>
    %39 = vector.extract_strided_slice %38 {offsets = [0, 0], sizes = [3, 128], strides = [1, 1]} : vector<8x128xf32> to vector<3x128xf32>
    %40 = math.absf %39 : vector<3x128xf32>
    %cst_27 = arith.constant 0.000000e+00 : f32
    %41 = vector.broadcast %cst_27 : f32 to vector<3x128xf32>
    %42 = arith.subf %41, %40 : vector<3x128xf32>
    %43 = math.exp %42 : vector<3x128xf32>
    %cst_28 = arith.constant 1.000000e+00 : f32
    %44 = vector.broadcast %cst_28 : f32 to vector<3x128xf32>
    %45 = arith.addf %44, %43 : vector<3x128xf32>
    %46 = tpu.reciprocal %45 {approx = true} : vector<3x128xf32> -> vector<3x128xf32>
    %cst_29 = arith.constant 0.000000e+00 : f32
    %47 = vector.broadcast %cst_29 : f32 to vector<3x128xf32>
    %48 = arith.cmpf oge, %39, %47 : vector<3x128xf32>
    %49 = arith.mulf %43, %46 : vector<3x128xf32>
    %50 = arith.select %48, %46, %49 : vector<3x128xi1>, vector<3x128xf32>
    %c0_30 = arith.constant 0 : index
    %c0_31 = arith.constant 0 : index
    %51 = vector.load %arg9[%c0_30, %c0_31] : memref<4x128xf32, #tpu.memory_space<vmem>>, vector<3x128xf32>
    tpu.vector_store %arg9[%c0_30, %c0_31], %50 {strides = array<i32>} : memref<4x128xf32, #tpu.memory_space<vmem>>, vector<3x128xf32>,
    %c3 = arith.constant 3 : index
    %c0_32 = arith.constant 0 : index
    %52 = vector.load %arg9[%c3, %c0_32] : memref<4x128xf32, #tpu.memory_space<vmem>>, vector<1x128xf32>
    tpu.vector_store %arg9[%c3, %c0_32], %21 {strides = array<i32>} : memref<4x128xf32, #tpu.memory_space<vmem>>, vector<1x128xf32>,
    return
  }
  func.func @transform_0(%arg0: i32) -> (i32, i32) {
    %c0_i32 = arith.constant 0 : i32
    %c0_i32_0 = arith.constant 0 : i32
    return %c0_i32, %arg0 : i32, i32
  }
  func.func @transform_1(%arg0: i32) -> (i32, i32) {
    %c0_i32 = arith.constant 0 : i32
    %c0_i32_0 = arith.constant 0 : i32
    return %c0_i32, %arg0 : i32, i32
  }
  func.func @transform_2(%arg0: i32) -> (i32, i32) {
    %c0_i32 = arith.constant 0 : i32
    %c0_i32_0 = arith.constant 0 : i32
    %c0_i32_1 = arith.constant 0 : i32
    return %c0_i32, %c0_i32_0 : i32, i32
  }
  func.func @transform_3(%arg0: i32) -> (i32, i32) {
    %c0_i32 = arith.constant 0 : i32
    %c0_i32_0 = arith.constant 0 : i32
    %c0_i32_1 = arith.constant 0 : i32
    return %c0_i32, %c0_i32_0 : i32, i32
  }
  func.func @transform_4(%arg0: i32) -> (i32, i32) {
    %c0_i32 = arith.constant 0 : i32
    %c0_i32_0 = arith.constant 0 : i32
    %c0_i32_1 = arith.constant 0 : i32
    return %c0_i32, %c0_i32_0 : i32, i32
  }
  func.func @transform_5(%arg0: i32) -> (i32, i32) {
    %c0_i32 = arith.constant 0 : i32
    %c0_i32_0 = arith.constant 0 : i32
    %c0_i32_1 = arith.constant 0 : i32
    return %c0_i32, %c0_i32_0 : i32, i32
  }
  func.func @transform_6(%arg0: i32) -> (i32, i32) {
    %c0_i32 = arith.constant 0 : i32
    %c0_i32_0 = arith.constant 0 : i32
    %c0_i32_1 = arith.constant 0 : i32
    return %c0_i32, %c0_i32_0 : i32, i32
  }
  func.func @transform_7(%arg0: i32) -> (i32, i32) {
    %c0_i32 = arith.constant 0 : i32
    %c0_i32_0 = arith.constant 0 : i32
    %c0_i32_1 = arith.constant 0 : i32
    return %c0_i32, %c0_i32_0 : i32, i32
  }
  func.func @transform_8(%arg0: i32) -> (i32, i32) {
    %c0_i32 = arith.constant 0 : i32
    %c0_i32_0 = arith.constant 0 : i32
    return %c0_i32, %arg0 : i32, i32
  }
}

</mosaic_0001>

<bundles_post_ra>
// kernel: tpu_custom_call.1
= control target key start
LH: loop header
LB: loop body
LE: loop exit
PB: predicated region body
PF: predicated region fallthrough
CT: control target
= control target key end

     0   :  { %13 = vsyncpa [#allocation5], 0  ;;  %s1664_s0 = inlined_call_operand.vmem [shape: bf16[32,256], index: 0, kind: input, shape index: {}]   ;;  %s1665_s1 = inlined_call_operand.vmem [shape: bf16[16,256], index: 1, kind: input, shape index: {}]   ;;  %s1666_s2 = inlined_call_operand.vmem [shape: bf16[64,32], index: 2, kind: input, shape index: {}]   ;;  %s1667_s3 = inlined_call_operand.vmem [shape: bf16[16,64], index: 3, kind: input, shape index: {}]   ;;  %s1668_s4 = inlined_call_operand.vmem [shape: bf16[64,16], index: 4, kind: input, shape index: {}]   ;;  %s1669_s5 = inlined_call_operand.vmem [shape: bf16[64,16], index: 5, kind: input, shape index: {}]   ;;  %s1670_s6 = inlined_call_operand.vmem [shape: bf16[64,64], index: 6, kind: input, shape index: {}]   ;;  %s1671_s7 = inlined_call_operand.vmem [shape: bf16[8,64], index: 7, kind: input, shape index: {}]   ;;  %s1672_s8 = inlined_call_operand.hbm [shape: f32[4,256], index: 8, kind: output, shape index: {}]  }
   0x1   :  { %15 = vsyncpa [#allocation5 + $0x1], 0  ;;  %s1462_s27 = smov 0   ;;  %s1464_s28 = smov 0  }
   0x2   :  { %s1466_s29 = smov 0   ;;  %s1468_s30 = smov 0  }
   0x3 LB: > { %s1123_s9 = sadd.s32 4294967295, %s1412_s30   ;;  %s1124_s10 = sadd.s32 4294967294, %s1412_s30   ;;  %s1412_s30 = sphi %s1468_s30, %s1679_s30   ;;  %s1408_s29 = sphi %s1466_s29, %s1678_s29   ;;  %s1404_s28 = sphi %s1464_s28, %s1677_s28   ;;  %s1400_s27 = sphi %s1462_s27, %s1676_s27  }
   0x4   : > { %s1485_s11 = sadd.s32 1, %s1412_s30   ;;  %s28_s12 = sadd.s32 1, %s1408_s29 }
   0x5   : > { %s25_s13 = ssub.s32 %s1412_s30, %s1485_s11  ;;  %p35_p0 = scmp.ne.s32.totalorder %s1408_s29, %s1404_s28 }
   0x6   : > { %p26_p1 = scmp.eq.s32.totalorder %s25_s13, 0  ;;  %p36_p2 = scmp.eq.s32.totalorder %s1412_s30, 0 }
   0x7   : > { %p217_p3 = scmp.eq.s32.totalorder %s1123_s9, 1  ;;  %p222_p4 = scmp.ne.s32.totalorder %s1404_s28, %s1400_s27 }
   0x8   : > { %s1498_s14 = scalar_select %p26_p1, %s1408_s29, %s28_s12  }
   0x9   : > { %p1500_p5 = por %p36_p2, %p35_p0  ;;  %p1504_p6 = por %p217_p3, %p35_p0 }
   0xa   : > { %p223_p7 = scmp.eq.s32.totalorder %s1124_s10, 1  ;;  %p1126_p9 = scmp.ge.s32.totalorder %s1412_s30, 2 }
   0xc   : > { %p1508_p8 = por %p223_p7, %p222_p4  ;;  %257 = sbr.rel (%p1126_p9) target bundleno = 28 (0x1c), region = 40 }
  0x11   : > { %260 = sbr.rel (!%p1500_p5) target bundleno = 23 (0x17), region = 44  ;;  %s262_s18 = sand.u32 (%p1500_p5), 1, %s1408_s29  }
  0x12   : > { %s1128_s19 = sshll.u32 (%p1500_p5), %s1412_s30, 2  ;;  %s1127_s20 = sshll.u32 (%p1500_p5), %s262_s18, 4 }
  0x13   : > { %s266_s23 = scalar_lea.vmem (%p1500_p5), %s1664_s0, %s1128_s19  ;;  %s264_s24 = scalar_lea.vmem (%p1500_p5), [#allocation2], %s1127_s20 }
  0x14   : > { %v283_v0 = vld [vmem:[%s266_s23] sm:$0xf] (%p1500_p5)  ;;  %v285_v1 = vld [vmem:[%s266_s23 + $0x8] sm:$0xf] (%p1500_p5)  ;;  %v287_v2 = vld [vmem:[%s266_s23 + $0x10] sm:$0xf] (%p1500_p5) }
  0x15   : > { %284 = vst [vmem:[%s264_s24] sm:$0xf] (%p1500_p5), %v283_v0  ;;  %286 = vst [vmem:[%s264_s24 + $0x4] sm:$0xf] (%p1500_p5), %v285_v1  ;;  %v289_v3 = vld [vmem:[%s266_s23 + $0x18] sm:$0xf] (%p1500_p5) }
  0x16   : > { %288 = vst [vmem:[%s264_s24 + $0x8] sm:$0xf] %v287_v2  ;;  %290 = vst [vmem:[%s264_s24 + $0xc] sm:$0xf] %v289_v3 }
  0x17 PF: > { %322 = sbr.rel (!%p1500_p5) target bundleno = 28 (0x1c), region = 85  ;;  %s324_s25 = sand.u32 (%p1500_p5), 1, %s1408_s29  }
  0x18   : > { %s1130_s26 = sshll.u32 (%p1500_p5), %s1412_s30, 2  ;;  %s1129_s10 = sshll.u32 (%p1500_p5), %s324_s25, 3 }
  0x19   : > { %s328_s18 = scalar_lea.vmem (%p1500_p5), %s1665_s1, %s1130_s26  ;;  %s326_s19 = scalar_lea.vmem (%p1500_p5), [#allocation3], %s1129_s10 }
  0x1a   : > { %v345_v4 = vld [vmem:[%s328_s18] sm:$0xf] (%p1500_p5)  ;;  %v347_v5 = vld [vmem:[%s328_s18 + $0x8] sm:$0xf] (%p1500_p5) }
  0x1b   : > { %346 = vst [vmem:[%s326_s19] sm:$0xf] (%p1500_p5), %v345_v4  ;;  %348 = vst [vmem:[%s326_s19 + $0x4] sm:$0xf] (%p1500_p5), %v347_v5 }
  0x1c PF: > { %p1131_p10 = scmp.ge.s32.totalorder %s1412_s30, 1  ;;  %p375_p11 = scmp.lt.s32.totalorder %s1412_s30, 3 }
  0x1e   : > { %p376_p12 = pnand %p1131_p10, %p375_p11 }
  0x1f   : > { %s1532_s15 = sand.u32 (!%p376_p12), 1, %s1404_s28  }
  0x20   : > { %379 = sbr.rel (%p376_p12) target bundleno = 1169 (0x491), region = 126  ;;  %s1132_s22 = sshll.u32 (!%p376_p12), %s1532_s15, 4 }
  0x21   : > { %s384_s23 = scalar_lea.vmem (!%p376_p12), [#allocation2], %s1132_s22  ;;  %s1133_s20 = sshll.u32 (!%p376_p12), %s1532_s15, 3 }
  0x22   : > { %s391_s21 = scalar_lea.vmem (!%p376_p12), [#allocation3], %s1133_s20  ;;  %s1134_s26 = sshll.u32 (!%p376_p12), %s1532_s15, 2 }
  0x23   : > { %s1594_s10 = scalar_lea.vmem (!%p376_p12), [#allocation4], %s1134_s26  ;;  %s1174_s26 = sshll.u32 (!%p376_p12), %s1123_s9, 6 }
  0x24   : > { %s1041_s12 = sshll.u32 (!%p376_p12), %s1594_s10, 4  ;;  %s1626_s19 = scalar_lea.hbm (!%p376_p12), %s1672_s8, %s1174_s26  ;;  %s1042_s12 = int_to_ptr.vmem [resolvable:$true] %s1041_s12 }
  0x25   : > { %v1326_v6 = vld [vmem:[%s1666_s2] sm:$0xff]   ;;  %vm471_vm0 = vcmask 261120   ;;  %v1324_v7 = vld [vmem:[%s384_s23 + $0x8] sm:$0xff]   ;;  %v1328_v10 = vld [vmem:[%s1666_s2 + $0x10] sm:$0xff]   ;;  %v1414_v12 = vmov 0.0   ;;  %vm1415_vm1 = vmmov 0  }
  0x26   : > { %1215 = vmatprep.mubr.msk.bf16.mxu0 %vm471_vm0, %v1326_v6  ;;  %v1325_v8 = vld [vmem:[%s384_s23] sm:$0xff]   ;;  %1211 = vmatprep.subr.bf16.mxu0 %v1324_v7  ;;  %v1327_v9 = vld [vmem:[%s1666_s2 + $0x8] sm:$0xff]   ;;  %v1329_v11 = vld [vmem:[%s1666_s2 + $0x18] sm:$0xff]   ;;  %vm568_vm2 = vcmask 523264   ;;  %vm662_vm3 = vcmask 130048   ;;  %s1028_s20 = scalar_lea.sflag [#allocation5], %s1532_s15 }
  0x27   : > { %1212 = vmatpush3.bf16.msra.mxu0 %v1324_v7  ;;  %1223 = vmatprep.subr.bf16.mxu1 %v1414_v12  ;;  %v1330_v33 = vld [vmem:[%s1667_s3] sm:$0xff]   ;;  %v1335_v36 = vld [vmem:[%s1668_s4 + $0x8] sm:$0xff]   ;;  %v1337_v38 = vld [vmem:[%s1668_s4 + $0x10] sm:$0xff]   ;;  %s1416_s22 = smov [#allocation4]  }
  0x28   : > { %1213 = vmatprep.subr.bf16.mxu0 %v1325_v8  ;;  %1231 = vmatprep.mubr.msk.bf16.mxu1 %vm1415_vm1, %v1414_v12  ;;  %v1331_v34 = vld [vmem:[%s391_s21] sm:$0xff]   ;;  %v1339_v39 = vld [vmem:[%s1668_s4 + $0x18] sm:$0xff]   ;;  %v1336_v50 = vld [vmem:[%s1669_s5 + $0x10] sm:$0xff]   ;;  %s1352_s21 = scalar_lea.vmem %s1042_s12, 64  ;;  %s1356_s9 = sshll.u32 %s1416_s22, 4  ;;  %s1357_s9 = int_to_ptr.vmem [resolvable:$false] %s1356_s9 }
  0x29   : > { %v1333_v35 = vld [vmem:[%s1668_s4] sm:$0xff]   ;;  %v1334_v49 = vld [vmem:[%s1669_s5 + $0x8] sm:$0xff]   ;;  %v1338_v51 = vld [vmem:[%s1669_s5 + $0x18] sm:$0xff]   ;;  %p1353_p13 = scmp.ne.s32.totalorder %s1042_s12, %s1352_s21  ;;  %s1358_s23 = scalar_lea.vmem %s1357_s9, 128 }
  0x2a   : > { %v1332_v37 = vld [vmem:[%s1669_s5] sm:$0xff]   ;;  %p1359_p2 = scmp.lt.s32.totalorder %s1042_s12, %s1357_s9  ;;  %p1360_p3 = scmp.lt.s32.totalorder %s1358_s23, %s1352_s21 }
  0x2b   : > { %1214 = vmatpush3.bf16.msra.mxu0 %v1325_v8  ;;  %v1340_v57 = vld [vmem:[%s1670_s6] sm:$0xff]   ;;  %p1354_p0 = pnand %p1353_p13, %p1504_p6 }
  0x2c   : > { %p1361_p4 = por %p1360_p3, %p1359_p2 }
  0x2d   : > { %p1355_p1 = pneg %p1354_p0 }
  0x2e   : > { %1216 = vmatmul.mubr.msk.bf16.vlgmr.msra.gmra.mxu0 %vm471_vm0, %v1327_v9 }
  0x2f   : > { %1219 = vmatprep.mubr.msk.bf16.mxu0 %vm471_vm0, %v1328_v10  ;;  %p1362_p5 = pnand %p1361_p4, %p1355_p1 }
  0x36   : > { %1220 = vmatmul.mubr.msk.bf16.gmra.mxu0 %vm471_vm0, %v1329_v11 }
  0x37   : > { %1237 = vmatprep.mubr.msk.bf16.mxu0 %vm662_vm3, %v1332_v37 }
  0xee   : > { %v1217_v13 = vpop.f32.mrf.mxu0 }
  0xef   : > { %v551_v28 = vmax.f32 %v1217_v13, 0.0 }
  0xf0   : > { %v518_v14 = vpop.f32.mrf.mxu0 }
  0xf1   : > { %v549_v31 = vmax.f32 %v518_v14, 0.0 }
  0xf2   : > { %v1218_v15 = vpop.f32.mrf.mxu0 }
  0xf3   : > { %v552_v26 = vmax.f32 %v1218_v15, 0.0 }
  0xf4   : > { %v521_v16 = vpop.f32.mrf.mxu0 }
  0xf5   : > { %v558_v29 = vpack.c.bf16 %v552_v26, %v551_v28  ;;  %v550_v30 = vmax.f32 %v521_v16, 0.0 }
  0xf6   : > { %v1221_v17 = vpop.f32.mrf.mxu0 }
  0xf7   : > { %v555_v20 = vmax.f32 %v1221_v17, 0.0  ;;  %v557_v32 = vpack.c.bf16 %v550_v30, %v549_v31  ;;  %v1341_v31 = vld [vmem:[%s1670_s6 + $0x8] sm:$0xff]  }
  0xf8   : > { %v534_v18 = vpop.f32.mrf.mxu0 }
  0xf9   : > { %v553_v25 = vmax.f32 %v534_v18, 0.0 }
  0xfa   : > { %v1222_v19 = vpop.f32.mrf.mxu0 }
  0xfb   : > { %v556_v21 = vmax.f32 %v1222_v19, 0.0 }
  0xfc   : > { %v537_v22 = vpop.f32.mrf.mxu0 }
  0xfd   : > { %v554_v23 = vmax.f32 %v537_v22, 0.0  ;;  %v560_v24 = vpack.c.bf16 %v556_v21, %v555_v20 }
  0xff   : > { %1224 = vmatpush3.bf16.msra.mxu1 %v560_v24  ;;  %v559_v27 = vpack.c.bf16 %v554_v23, %v553_v25 }
 0x100   : > { %1225 = vmatprep.subr.bf16.mxu1 %v1414_v12 }
 0x103   : > { %1226 = vmatpush3.bf16.msra.mxu1 %v559_v27 }
 0x104   : > { %1227 = vmatprep.subr.bf16.mxu1 %v1414_v12 }
 0x107   : > { %1228 = vmatpush3.bf16.msra.mxu1 %v558_v29 }
 0x108   : > { %1229 = vmatprep.subr.bf16.mxu1 %v1414_v12 }
 0x10b   : > { %1230 = vmatpush3.bf16.msra.mxu1 %v557_v32  ;;  %v1342_v32 = vld [vmem:[%s1670_s6 + $0x10] sm:$0xff]  }
 0x10c   : > { %1245 = vmatprep.subr.bf16.mxu1 %v1331_v34 }
 0x10e   : > { %1232 = vmatmul.mubr.msk.bf16.vlgmr.msra.gmra.mxu1 %vm568_vm2, %v1330_v33  ;;  %v1343_v33 = vld [vmem:[%s1670_s6 + $0x18] sm:$0xff]  }
 0x10f   : > { %1246 = vmatpush3.bf16.msra.mxu1 %v1331_v34  ;;  %1247 = vmatprep.mubr.msk.bf16.mxu1 %vm662_vm3, %v1333_v35 }
 0x110   : > { %1271 = vmatprep.subr.bf16.mxu1 %v1414_v12 }
 0x116   : > { %1248 = vmatmul.mubr.msk.bf16.vlgmr.msra.gmra.mxu1 %vm662_vm3, %v1335_v36 }
 0x117   : > { %1251 = vmatprep.mubr.msk.bf16.mxu1 %vm662_vm3, %v1337_v38 }
 0x11e   : > { %1252 = vmatmul.mubr.msk.bf16.gmra.mxu1 %vm662_vm3, %v1339_v39 }
 0x11f   : > { %1279 = vmatprep.mubr.msk.bf16.mxu1 %vm1415_vm1, %v1414_v12 }
 0x1ce   : > { %v606_v40 = vpop.f32.mrf.mxu1 }
 0x1cf   : > { %v613_v41 = vmul.f32 -1000.0, %v606_v40 }
 0x1d0   : > { %v1233_v42 = vpop.f32.mrf.mxu1 }
 0x1d1   : > { %v614_v43 = vand.u32 2147483647, %v613_v41  ;;  %vm620_vm4 = vcmp.ge.f32.partialorder %v613_v41, 0.0 }
 0x1d2   : > { %v609_v44 = vpop.f32.mrf.mxu1 }
 0x1d3   : > { %v615_v45 = vsub.f32 0.0, %v614_v43  ;;  %v623_v46 = vpack.c.bf16 %v609_v44, %v606_v40 }
 0x1d4   : > { %v1234_v47 = vpop.f32.mrf.mxu1 }
 0x1d5   : > { %v616_v48 = vmul.f32 1.442695, %v615_v45  ;;  %1235 = vmatprep.subr.bf16.mxu0 %v623_v46 }
 0x1d6   : > { %1236 = vmatpush3.bf16.msra.mxu0 %v623_v46  ;;  %v1249_v58 = vpop.f32.mrf.mxu1 }
 0x1d7   : > { %1344 = vpow2.f32 %v616_v48 }
 0x1d8   : > { %v812_v59 = vpop.f32.mrf.mxu1 }
 0x1d9   : > { %1238 = vmatmul.mubr.msk.bf16.vlgmr.msra.gmra.mxu0 %vm662_vm3, %v1334_v49 }
 0x1da   : > { %1241 = vmatprep.mubr.msk.bf16.mxu0 %vm662_vm3, %v1336_v50  ;;  %v1250_v60 = vpop.f32.mrf.mxu1 }
 0x1dc   : > { %v815_v61 = vpop.f32.mrf.mxu1 }
 0x1de   : > { %v1253_v0 = vpop.f32.mrf.mxu1 }
 0x1e0   : > { %v828_v3 = vpop.f32.mrf.mxu1 }
 0x1e1   : > { %1242 = vmatmul.mubr.msk.bf16.gmra.mxu0 %vm662_vm3, %v1338_v51 }
 0x1e2   : > { %1263 = vmatprep.mubr.msk.bf16.mxu0 %vm568_vm2, %v1340_v57  ;;  %v1254_v6 = vpop.f32.mrf.mxu1 }
 0x1e4   : > { %v1345_v52 = vpop.eup %1344  ;;  %v831_v13 = vpop.f32.mrf.mxu1 }
 0x1e5   : > { %v618_v53 = vadd.f32 1.0, %v1345_v52 }
 0x1e7   : > { %1346 = vrcp.f32 %v618_v53 }
 0x1f4   : > { %v1347_v54 = vpop.eup %1346 }
 0x1f5   : > { %v621_v55 = vmul.f32 %v1347_v54, %v1345_v52 }
 0x1f7   : > { %v622_v56 = vsel %vm620_vm4, %v1347_v54, %v621_v55  ;;  %v972_v54 = vld [vmem:[%s1671_s7] sm:$0xf] }
 0x1f8   : > { %1026 = vst [vmem:[%s1594_s10 + $0x3] sm:$0x1] %v622_v56 }
 0x299   : > { %v1239_v62 = vpop.f32.mrf.mxu0 }
 0x29a   : > { %v821_v18 = vadd.f32 %v1249_v58, %v1239_v62 }
 0x29b   : > { %v709_v63 = vpop.f32.mrf.mxu0 }
 0x29c   : > { %v845_v25 = vmax.f32 %v821_v18, 0.0  ;;  %v813_v26 = vadd.f32 %v812_v59, %v709_v63 }
 0x29d   : > { %v1240_v1 = vpop.f32.mrf.mxu0 }
 0x29e   : > { %v824_v14 = vadd.f32 %v1250_v60, %v1240_v1  ;;  %v843_v29 = vmax.f32 %v813_v26, 0.0 }
 0x29f   : > { %v712_v2 = vpop.f32.mrf.mxu0 }
 0x2a0   : > { %v846_v22 = vmax.f32 %v824_v14, 0.0  ;;  %v816_v23 = vadd.f32 %v815_v61, %v712_v2 }
 0x2a1   : > { %v1243_v4 = vpop.f32.mrf.mxu0 }
 0x2a2   : > { %v837_v7 = vadd.f32 %v1253_v0, %v1243_v4  ;;  %v852_v27 = vpack.c.bf16 %v846_v22, %v845_v25  ;;  %v844_v28 = vmax.f32 %v816_v23, 0.0 }
 0x2a3   : > { %v725_v5 = vpop.f32.mrf.mxu0 }
 0x2a4   : > { %v829_v9 = vadd.f32 %v828_v3, %v725_v5  ;;  %v849_v15 = vmax.f32 %v837_v7, 0.0  ;;  %v851_v30 = vpack.c.bf16 %v844_v28, %v843_v29 }
 0x2a5   : > { %v1244_v8 = vpop.f32.mrf.mxu0 }
 0x2a6   : > { %v840_v10 = vadd.f32 %v1254_v6, %v1244_v8  ;;  %v847_v19 = vmax.f32 %v829_v9, 0.0 }
 0x2a7   : > { %v728_v11 = vpop.f32.mrf.mxu0 }
 0x2a8   : > { %v850_v16 = vmax.f32 %v840_v10, 0.0  ;;  %v832_v17 = vadd.f32 %v831_v13, %v728_v11 }
 0x2aa   : > { %v854_v20 = vpack.c.bf16 %v850_v16, %v849_v15  ;;  %v848_v21 = vmax.f32 %v832_v17, 0.0 }
 0x2ac   : > { %v853_v24 = vpack.c.bf16 %v848_v21, %v847_v19  ;;  %1255 = vmatprep.subr.bf16.mxu0 %v854_v20 }
 0x2ad   : > { %1256 = vmatpush3.bf16.msra.mxu0 %v854_v20 }
 0x2ae   : > { %1257 = vmatprep.subr.bf16.mxu0 %v853_v24 }
 0x2b1   : > { %1258 = vmatpush3.bf16.msra.mxu0 %v853_v24 }
 0x2b2   : > { %1259 = vmatprep.subr.bf16.mxu0 %v852_v27 }
 0x2b5   : > { %1260 = vmatpush3.bf16.msra.mxu0 %v852_v27 }
 0x2b6   : > { %1261 = vmatprep.subr.bf16.mxu0 %v851_v30 }
 0x2b9   : > { %1262 = vmatpush3.bf16.msra.mxu0 %v851_v30 }
 0x2bc   : > { %1264 = vmatmul.mubr.msk.bf16.vlgmr.msra.gmra.mxu0 %vm568_vm2, %v1341_v31 }
 0x2bd   : > { %1267 = vmatprep.mubr.msk.bf16.mxu0 %vm568_vm2, %v1342_v32 }
 0x2c4   : > { %1268 = vmatmul.mubr.msk.bf16.gmra.mxu0 %vm568_vm2, %v1343_v33 }
 0x37c   : > { %v1265_v34 = vpop.f32.mrf.mxu0 }
 0x37d   : > { %v962_v49 = vmax.f32 %v1265_v34, 0.0 }
 0x37e   : > { %v929_v35 = vpop.f32.mrf.mxu0 }
 0x37f   : > { %v960_v52 = vmax.f32 %v929_v35, 0.0 }
 0x380   : > { %v1266_v36 = vpop.f32.mrf.mxu0 }
 0x381   : > { %v963_v47 = vmax.f32 %v1266_v36, 0.0 }
 0x382   : > { %v932_v37 = vpop.f32.mrf.mxu0 }
 0x383   : > { %v969_v50 = vpack.c.bf16 %v963_v47, %v962_v49  ;;  %v961_v51 = vmax.f32 %v932_v37, 0.0 }
 0x384   : > { %v1269_v38 = vpop.f32.mrf.mxu0 }
 0x385   : > { %v966_v41 = vmax.f32 %v1269_v38, 0.0  ;;  %v968_v53 = vpack.c.bf16 %v961_v51, %v960_v52 }
 0x386   : > { %v945_v39 = vpop.f32.mrf.mxu0 }
 0x387   : > { %v964_v46 = vmax.f32 %v945_v39, 0.0 }
 0x388   : > { %v1270_v40 = vpop.f32.mrf.mxu0 }
 0x389   : > { %v967_v42 = vmax.f32 %v1270_v40, 0.0 }
 0x38a   : > { %v948_v43 = vpop.f32.mrf.mxu0 }
 0x38b   : > { %v971_v44 = vpack.c.bf16 %v967_v42, %v966_v41  ;;  %v965_v45 = vmax.f32 %v948_v43, 0.0 }
 0x38d   : > { %1272 = vmatpush3.bf16.msra.mxu1 %v971_v44  ;;  %v970_v48 = vpack.c.bf16 %v965_v45, %v964_v46 }
 0x38e   : > { %1273 = vmatprep.subr.bf16.mxu1 %v1414_v12 }
 0x391   : > { %1274 = vmatpush3.bf16.msra.mxu1 %v970_v48 }
 0x392   : > { %1275 = vmatprep.subr.bf16.mxu1 %v1414_v12 }
 0x395   : > { %1276 = vmatpush3.bf16.msra.mxu1 %v969_v50 }
 0x396   : > { %1277 = vmatprep.subr.bf16.mxu1 %v1414_v12 }
 0x399   : > { %1278 = vmatpush3.bf16.msra.mxu1 %v968_v53 }
 0x39c   : > { %1280 = vmatmul.mubr.msk.bf16.vlgmr.msra.gmra.mxu1 %vm568_vm2, %v972_v54 }
 0x45c   : > { %v1010_v55 = vpop.f32.mrf.mxu1 }
 0x45d   : > { %v1016_v56 = vand.u32 2147483647, %v1010_v55  ;;  %vm1022_vm5 = vcmp.ge.f32.partialorder %v1010_v55, 0.0 }
 0x45e   : > { %v1281_v57 = vpop.f32.mrf.mxu1 }
 0x45f   : > { %v1017_v58 = vsub.f32 0.0, %v1016_v56 }
 0x460   : > { %v1013_v59 = vpop.f32.mrf.mxu1 }
 0x461   : > { %v1018_v60 = vmul.f32 1.442695, %v1017_v58 }
 0x462   : > { %v1282_v61 = vpop.f32.mrf.mxu1 }
 0x463   : > { %1348 = vpow2.f32 %v1018_v60 }
 0x470   : > { %v1349_v12 = vpop.eup %1348 }
 0x471   : > { %v1020_v62 = vadd.f32 1.0, %v1349_v12 }
 0x473   : > { %1350 = vrcp.f32 %v1020_v62 }
 0x480   : > { %v1351_v63 = vpop.eup %1350 }
 0x481   : > { %v1023_v0 = vmul.f32 %v1351_v63, %v1349_v12 }
 0x483   : > { %v1024_v1 = vsel %vm1022_vm5, %v1351_v63, %v1023_v0 }
 0x484   : > { %1025 = vst [vmem:[%s1594_s10] sm:$0x7] %v1024_v1 }
 0x485   : > { %1365 = shalt.err (!%p1362_p5)
}
 0x486   : > { %s1366_s10 = scalar_lea.hbm %s1626_s19, 64  ;;  %s1370_s25 = scalar_lea.hbm %s1672_s8, 128 }
 0x487   : > { %p1367_p7 = scmp.ne.s32.totalorder %s1626_s19, %s1366_s10  ;;  %p1371_p12 = scmp.lt.s32.totalorder %s1626_s19, %s1672_s8 }
 0x488   : > { %p1372_p13 = scmp.lt.s32.totalorder %s1370_s25, %s1366_s10 }
 0x489   : > { %p1368_p10 = pnand %p1367_p7, %p1504_p6 }
 0x48a   : > { %p1373_p0 = por %p1372_p13, %p1371_p12 }
 0x48b   : > { %p1369_p11 = pneg %p1368_p10 }
 0x48d   : > { %p1374_p1 = pnand %p1373_p0, %p1369_p11 }
 0x48f   : > { %1377 = shalt.err (!%p1374_p1)
}
 0x490   : > { %1283 = dma.vmem_to_hbm [thread:$0]  (%p1504_p6), %s1042_s12, 64, %s1626_s19, %s1028_s20  }
 0x491 PF: > { %s1053_s18 = sand.u32 1, %s1400_s27   ;;  %p1286_p2 = pnand %p1126_p9, %p1508_p8 }
 0x492   : > { %s1054_s21 = scalar_lea.sflag [#allocation5], %s1053_s18 }
 0x493   : > { %p1287_p3 = pneg %p1286_p2 }
 0x495   : > { %1395 = dma.done.wait (%p1287_p3), %s1054_s21, 64  }
 0x496   : > { %1397 = vsyncadd (%p1287_p3), %s1054_s21, 4294967232  ;;  %p18_p4 = scmp.ge.s32.totalorder %s1485_s11, 4   ;;  %s1676_s27 = smov %s1404_s28 }
 0x497   : > { %s1677_s28 = smov %s1408_s29  ;;  %s1678_s29 = smov %s1498_s14 }
 0x498   : > { %s1679_s30 = smov %s1485_s11  ;;  %20 = sbr.rel (!%p18_p4) target bundleno = 3 (0x3), region = 182 }
 0x49d   :  { %1059 = vsyncpa [#allocation5], 1 }
 0x49e   :  { %1061 = vsyncpa [#allocation5 + $0x1], 1 }

</bundles_post_ra>
